<compile_context>
chip_gen: v6e
topology: v6e:2x2x1
jax: 0.10.0
libtpu: 0.0.40
codegen_flags: <defaults>
</compile_context>

<pallas_src>
import math

import jax
import jax.numpy as jnp
from jax.experimental import pallas as pl
from jax.experimental.pallas import tpu as pltpu


def make_lif_forward(n_inputs, n_neurons, n_steps,
                     voltage_tau=100.0, synapse_tau=50.0,
                     spiking_threshold=1.0, neuron_tile=None):
    """Returns forward(spike_train, weights, synapses, voltages) running all T steps fused."""
    v_decay = math.exp(-1.0 / voltage_tau)
    s_decay = math.exp(-1.0 / synapse_tau)
    thr = float(spiking_threshold)

    if neuron_tile is None:
        neuron_tile = n_neurons if n_neurons <= 512 else 512
    assert n_neurons % neuron_tile == 0, "neuron_tile must divide n_neurons"
    assert neuron_tile == n_neurons or neuron_tile % 128 == 0, \
        "neuron_tile must be lane-aligned (multiple of 128) unless it is the full width"
    n_tiles = n_neurons // neuron_tile

    def lif_kernel(spk_smem,                       # (T, I) int32 spikes, SMEM (scalar prefetch)
                   w_ref, syn0_ref, v0_ref,        # VMEM inputs, resident across T
                   spk_out_ref, vtrace_ref, syn_ref,  # VMEM outputs (syn_ref = accumulator)
                   v_scr):                         # (1, tile) f32 voltage scratch
        t = pl.program_id(1)

        # Load initial state into the resident accumulators at the start of each neuron tile.
        @pl.when(t == 0)
        def _():
            syn_ref[...] = syn0_ref[...]
            v_scr[...] = v0_ref[...]

        # voltages *= voltage_decay ; output_spikes = voltages >= threshold
        v = v_scr[...] * v_decay                       # (1, tile)
        spikes = (v >= thr).astype(jnp.float32)        # (1, tile)

        # synapses = synapses * synapse_decay + weights * input_spikes[:, None]
        # spike scalars come from SMEM and are broadcast per input row; the row sum
        # (synaptic input to the voltage) is accumulated inline on the VPU.
        syn_in = jnp.zeros_like(v)
        for i in range(n_inputs):                      # static unroll, n_inputs is small
            s_i = spk_smem[t, i].astype(jnp.float32)   # scalar 0/1
            row = pl.ds(i, 1)
            new_row = syn_ref[row, :] * s_decay + w_ref[row, :] * s_i
            syn_ref[row, :] = new_row
            syn_in = syn_in + new_row

        # voltages += synapses.sum(0) - output_spikes * threshold
        v_new = v + syn_in - spikes * thr
        v_scr[...] = v_new

        spk_out_ref[...] = spikes                      # packed (T, 1, N) spike output
        vtrace_ref[...] = v_new                        # packed (T, 1, N) voltage trace

    grid_spec = pltpu.PrefetchScalarGridSpec(
        num_scalar_prefetch=1,
        grid=(n_tiles, n_steps),
        in_specs=[
            pl.BlockSpec((n_inputs, neuron_tile), lambda n, t, spk: (0, n)),  # weights (resident)
            pl.BlockSpec((n_inputs, neuron_tile), lambda n, t, spk: (0, n)),  # initial synapses
            pl.BlockSpec((1, neuron_tile), lambda n, t, spk: (0, n)),         # initial voltages
        ],
        out_specs=(
            pl.BlockSpec((None, 1, neuron_tile), lambda n, t, spk: (t, 0, n)),      # spikes
            pl.BlockSpec((None, 1, neuron_tile), lambda n, t, spk: (t, 0, n)),      # voltage trace
            pl.BlockSpec((n_inputs, neuron_tile), lambda n, t, spk: (0, n)),        # final synapses
        ),
        scratch_shapes=[pltpu.VMEM((1, neuron_tile), jnp.float32)],
    )

    call = pl.pallas_call(
        lif_kernel,
        out_shape=(
            jax.ShapeDtypeStruct((n_steps, 1, n_neurons), jnp.float32),   # spikes per step
            jax.ShapeDtypeStruct((n_steps, 1, n_neurons), jnp.float32),   # voltage trace
            jax.ShapeDtypeStruct((n_inputs, n_neurons), jnp.float32),     # final synapses
        ),
        grid_spec=grid_spec,
        compiler_params=pltpu.CompilerParams(
            dimension_semantics=("parallel", "arbitrary")),
    )

    @jax.jit
    def forward(spike_train, weights, synapses, voltages):
        spk_i32 = spike_train.reshape(n_steps, n_inputs).astype(jnp.int32)
        spk_f32, vtrace, syn_new = call(spk_i32, weights, synapses, voltages)
        out_spikes = spk_f32.reshape(n_steps, n_neurons).astype(jnp.bool_)
        vtrace = vtrace.reshape(n_steps, n_neurons)
        new_volt = vtrace[-1:, :]
        return out_spikes, vtrace, new_volt, syn_new

    return forward


def ref_run(spike_train, weights, synapses, voltages, v_decay, s_decay, thr):
    """Pure-JAX per-step reference matching the PyTorch forward exactly."""
    spikes_all, traces = [], []
    for t in range(spike_train.shape[0]):
        v = voltages * v_decay
        spk = v >= thr
        synapses = synapses * s_decay + weights * spike_train[t].astype(jnp.float32)[:, None]
        voltages = v + synapses.sum(axis=0, keepdims=True) - spk.astype(jnp.float32) * thr
        spikes_all.append(spk)
        traces.append(voltages)
    return (jnp.concatenate(spikes_all, axis=0),
            jnp.concatenate(traces, axis=0),
            voltages, synapses)


if __name__ == "__main__":
    n_inputs, n_neurons, n_steps = 16, 256, 8
    voltage_tau, synapse_tau, thr = 100.0, 50.0, 1.0
    v_decay = math.exp(-1.0 / voltage_tau)
    s_decay = math.exp(-1.0 / synapse_tau)

    key = jax.random.PRNGKey(0)
    k_w, k_s = jax.random.split(key)
    weights = jax.random.uniform(k_w, (n_inputs, n_neurons), jnp.float32, 0.0, 0.2)
    # T per-step inputs; each row is the module's (1, n_inputs) input_spikes.
    spike_train = jax.random.bernoulli(k_s, 0.5, (n_steps, n_inputs))

    voltages0 = jnp.zeros((1, n_neurons), jnp.float32)       # LIFLayer.__init__
    synapses0 = jnp.zeros((n_inputs, n_neurons), jnp.float32)

    forward = make_lif_forward(n_inputs, n_neurons, n_steps,
                               voltage_tau, synapse_tau, thr,
                               neuron_tile=128)  # exercises the 2-tile neuron grid

    out_spk, vtrace, v_fin, syn_fin = forward(spike_train, weights, synapses0, voltages0)
    jax.block_until_ready((out_spk, vtrace, v_fin, syn_fin))

    r_spk, r_trace, r_v, r_syn = ref_run(spike_train, weights, synapses0, voltages0,
                                         v_decay, s_decay, thr)

    ok = bool(jnp.array_equal(out_spk, r_spk))
    ok &= bool(jnp.allclose(vtrace, r_trace, atol=1e-5, rtol=1e-5))
    ok &= bool(jnp.allclose(v_fin, r_v, atol=1e-5, rtol=1e-5))
    ok &= bool(jnp.allclose(syn_fin, r_syn, atol=1e-5, rtol=1e-5))
    if not ok:
        raise SystemExit("mismatch vs reference")
    print("KERNEL_OK")
</pallas_src>

<mosaic_0001>
module attributes {stable_mosaic.version = 11 : i64} {
  func.func @lif_kernel(%arg0: i32, %arg1: i32, %arg2: memref<8x16xi32, #tpu.memory_space<smem>>, %arg3: memref<16x128xf32, #tpu.memory_space<vmem>>, %arg4: memref<16x128xf32, #tpu.memory_space<vmem>>, %arg5: memref<1x128xf32, #tpu.memory_space<vmem>>, %arg6: memref<1x1x128xf32, #tpu.memory_space<vmem>>, %arg7: memref<1x1x128xf32, #tpu.memory_space<vmem>>, %arg8: memref<16x128xf32, #tpu.memory_space<vmem>>, %arg9: memref<1x128xf32, #tpu.memory_space<vmem>>) attributes {dimension_semantics = [#tpu.dimension_semantics<parallel>, #tpu.dimension_semantics<arbitrary>], iteration_bounds = array<i64: 2, 8>, scalar_prefetch = 1 : i64, scratch_operands = 1 : i64, tpu.core_type = #tpu.core_type<tc>, window_params = [{transform_indices = @transform_0, window_bounds = array<i64: 16, 128>}, {transform_indices = @transform_1, window_bounds = array<i64: 16, 128>}, {transform_indices = @transform_2, window_bounds = array<i64: 1, 128>}, {transform_indices = @transform_3, window_bounds = array<i64: 1, 1, 128>}, {transform_indices = @transform_4, window_bounds = array<i64: 1, 1, 128>}, {transform_indices = @transform_5, window_bounds = array<i64: 16, 128>}]} {
    %c0_i32 = arith.constant 0 : i32
    %0 = arith.cmpi eq, %arg1, %c0_i32 : i32
    %1 = arith.extui %0 : i1 to i32
    %c0_i32_0 = arith.constant 0 : i32
    %2 = arith.cmpi ne, %1, %c0_i32_0 : i32
    scf.if %2 {
      %c0_126 = arith.constant 0 : index
      %c0_127 = arith.constant 0 : index
      %214 = vector.load %arg4[%c0_126, %c0_127] : memref<16x128xf32, #tpu.memory_space<vmem>>, vector<16x128xf32>
      %c0_128 = arith.constant 0 : index
      %c0_129 = arith.constant 0 : index
      %215 = vector.load %arg8[%c0_128, %c0_129] : memref<16x128xf32, #tpu.memory_space<vmem>>, vector<16x128xf32>
      tpu.vector_store %arg8[%c0_128, %c0_129], %214 {strides = array<i32>} : memref<16x128xf32, #tpu.memory_space<vmem>>, vector<16x128xf32>,
      %c0_130 = arith.constant 0 : index
      %c0_131 = arith.constant 0 : index
      %216 = vector.load %arg5[%c0_130, %c0_131] : memref<1x128xf32, #tpu.memory_space<vmem>>, vector<1x128xf32>
      %c0_132 = arith.constant 0 : index
      %c0_133 = arith.constant 0 : index
      %217 = vector.load %arg9[%c0_132, %c0_133] : memref<1x128xf32, #tpu.memory_space<vmem>>, vector<1x128xf32>
      tpu.vector_store %arg9[%c0_132, %c0_133], %216 {strides = array<i32>} : memref<1x128xf32, #tpu.memory_space<vmem>>, vector<1x128xf32>,
    } else {
    }
    %c0 = arith.constant 0 : index
    %c0_1 = arith.constant 0 : index
    %3 = vector.load %arg9[%c0, %c0_1] : memref<1x128xf32, #tpu.memory_space<vmem>>, vector<1x128xf32>
    %cst = arith.constant 0.990049839 : f32
    %4 = vector.broadcast %cst : f32 to vector<1x128xf32>
    %5 = arith.mulf %3, %4 : vector<1x128xf32>
    %cst_2 = arith.constant 1.000000e+00 : f32
    %6 = vector.broadcast %cst_2 : f32 to vector<1x128xf32>
    %7 = arith.cmpf oge, %5, %6 : vector<1x128xf32>
    %8 = arith.extui %7 : vector<1x128xi1> to vector<1x128xi32>
    %9 = arith.sitofp %8 : vector<1x128xi32> to vector<1x128xf32>
    %cst_3 = arith.constant 0.000000e+00 : f32
    %10 = vector.broadcast %cst_3 : f32 to vector<1x128xf32>
    %11 = arith.index_cast %arg1 : i32 to index
    %c0_4 = arith.constant 0 : index
    %12 = memref.load %arg2[%11, %c0_4] : memref<8x16xi32, #tpu.memory_space<smem>>
    %13 = arith.sitofp %12 : i32 to f32
    %c0_5 = arith.constant 0 : index
    %c0_6 = arith.constant 0 : index
    %14 = vector.load %arg8[%c0_5, %c0_6] : memref<16x128xf32, #tpu.memory_space<vmem>>, vector<1x128xf32>
    %cst_7 = arith.constant 0.980198681 : f32
    %15 = vector.broadcast %cst_7 : f32 to vector<1x128xf32>
    %16 = arith.mulf %14, %15 : vector<1x128xf32>
    %c0_8 = arith.constant 0 : index
    %c0_9 = arith.constant 0 : index
    %17 = vector.load %arg3[%c0_8, %c0_9] : memref<16x128xf32, #tpu.memory_space<vmem>>, vector<1x128xf32>
    %18 = vector.broadcast %13 : f32 to vector<1x128xf32>
    %19 = arith.mulf %17, %18 : vector<1x128xf32>
    %20 = arith.addf %16, %19 : vector<1x128xf32>
    %c0_10 = arith.constant 0 : index
    %c0_11 = arith.constant 0 : index
    %21 = vector.load %arg8[%c0_10, %c0_11] : memref<16x128xf32, #tpu.memory_space<vmem>>, vector<1x128xf32>
    tpu.vector_store %arg8[%c0_10, %c0_11], %20 {strides = array<i32>} : memref<16x128xf32, #tpu.memory_space<vmem>>, vector<1x128xf32>,
    %22 = arith.addf %10, %20 : vector<1x128xf32>
    %23 = arith.index_cast %arg1 : i32 to index
    %c1 = arith.constant 1 : index
    %24 = memref.load %arg2[%23, %c1] : memref<8x16xi32, #tpu.memory_space<smem>>
    %25 = arith.sitofp %24 : i32 to f32
    %c1_12 = arith.constant 1 : index
    %c0_13 = arith.constant 0 : index
    %26 = vector.load %arg8[%c1_12, %c0_13] : memref<16x128xf32, #tpu.memory_space<vmem>>, vector<1x128xf32>
    %cst_14 = arith.constant 0.980198681 : f32
    %27 = vector.broadcast %cst_14 : f32 to vector<1x128xf32>
    %28 = arith.mulf %26, %27 : vector<1x128xf32>
    %c1_15 = arith.constant 1 : index
    %c0_16 = arith.constant 0 : index
    %29 = vector.load %arg3[%c1_15, %c0_16] : memref<16x128xf32, #tpu.memory_space<vmem>>, vector<1x128xf32>
    %30 = vector.broadcast %25 : f32 to vector<1x128xf32>
    %31 = arith.mulf %29, %30 : vector<1x128xf32>
    %32 = arith.addf %28, %31 : vector<1x128xf32>
    %c1_17 = arith.constant 1 : index
    %c0_18 = arith.constant 0 : index
    %33 = vector.load %arg8[%c1_17, %c0_18] : memref<16x128xf32, #tpu.memory_space<vmem>>, vector<1x128xf32>
    tpu.vector_store %arg8[%c1_17, %c0_18], %32 {strides = array<i32>} : memref<16x128xf32, #tpu.memory_space<vmem>>, vector<1x128xf32>,
    %34 = arith.addf %22, %32 : vector<1x128xf32>
    %35 = arith.index_cast %arg1 : i32 to index
    %c2 = arith.constant 2 : index
    %36 = memref.load %arg2[%35, %c2] : memref<8x16xi32, #tpu.memory_space<smem>>
    %37 = arith.sitofp %36 : i32 to f32
    %c2_19 = arith.constant 2 : index
    %c0_20 = arith.constant 0 : index
    %38 = vector.load %arg8[%c2_19, %c0_20] : memref<16x128xf32, #tpu.memory_space<vmem>>, vector<1x128xf32>
    %cst_21 = arith.constant 0.980198681 : f32
    %39 = vector.broadcast %cst_21 : f32 to vector<1x128xf32>
    %40 = arith.mulf %38, %39 : vector<1x128xf32>
    %c2_22 = arith.constant 2 : index
    %c0_23 = arith.constant 0 : index
    %41 = vector.load %arg3[%c2_22, %c0_23] : memref<16x128xf32, #tpu.memory_space<vmem>>, vector<1x128xf32>
    %42 = vector.broadcast %37 : f32 to vector<1x128xf32>
    %43 = arith.mulf %41, %42 : vector<1x128xf32>
    %44 = arith.addf %40, %43 : vector<1x128xf32>
    %c2_24 = arith.constant 2 : index
    %c0_25 = arith.constant 0 : index
    %45 = vector.load %arg8[%c2_24, %c0_25] : memref<16x128xf32, #tpu.memory_space<vmem>>, vector<1x128xf32>
    tpu.vector_store %arg8[%c2_24, %c0_25], %44 {strides = array<i32>} : memref<16x128xf32, #tpu.memory_space<vmem>>, vector<1x128xf32>,
    %46 = arith.addf %34, %44 : vector<1x128xf32>
    %47 = arith.index_cast %arg1 : i32 to index
    %c3 = arith.constant 3 : index
    %48 = memref.load %arg2[%47, %c3] : memref<8x16xi32, #tpu.memory_space<smem>>
    %49 = arith.sitofp %48 : i32 to f32
    %c3_26 = arith.constant 3 : index
    %c0_27 = arith.constant 0 : index
    %50 = vector.load %arg8[%c3_26, %c0_27] : memref<16x128xf32, #tpu.memory_space<vmem>>, vector<1x128xf32>
    %cst_28 = arith.constant 0.980198681 : f32
    %51 = vector.broadcast %cst_28 : f32 to vector<1x128xf32>
    %52 = arith.mulf %50, %51 : vector<1x128xf32>
    %c3_29 = arith.constant 3 : index
    %c0_30 = arith.constant 0 : index
    %53 = vector.load %arg3[%c3_29, %c0_30] : memref<16x128xf32, #tpu.memory_space<vmem>>, vector<1x128xf32>
    %54 = vector.broadcast %49 : f32 to vector<1x128xf32>
    %55 = arith.mulf %53, %54 : vector<1x128xf32>
    %56 = arith.addf %52, %55 : vector<1x128xf32>
    %c3_31 = arith.constant 3 : index
    %c0_32 = arith.constant 0 : index
    %57 = vector.load %arg8[%c3_31, %c0_32] : memref<16x128xf32, #tpu.memory_space<vmem>>, vector<1x128xf32>
    tpu.vector_store %arg8[%c3_31, %c0_32], %56 {strides = array<i32>} : memref<16x128xf32, #tpu.memory_space<vmem>>, vector<1x128xf32>,
    %58 = arith.addf %46, %56 : vector<1x128xf32>
    %59 = arith.index_cast %arg1 : i32 to index
    %c4 = arith.constant 4 : index
    %60 = memref.load %arg2[%59, %c4] : memref<8x16xi32, #tpu.memory_space<smem>>
    %61 = arith.sitofp %60 : i32 to f32
    %c4_33 = arith.constant 4 : index
    %c0_34 = arith.constant 0 : index
    %62 = vector.load %arg8[%c4_33, %c0_34] : memref<16x128xf32, #tpu.memory_space<vmem>>, vector<1x128xf32>
    %cst_35 = arith.constant 0.980198681 : f32
    %63 = vector.broadcast %cst_35 : f32 to vector<1x128xf32>
    %64 = arith.mulf %62, %63 : vector<1x128xf32>
    %c4_36 = arith.constant 4 : index
    %c0_37 = arith.constant 0 : index
    %65 = vector.load %arg3[%c4_36, %c0_37] : memref<16x128xf32, #tpu.memory_space<vmem>>, vector<1x128xf32>
    %66 = vector.broadcast %61 : f32 to vector<1x128xf32>
    %67 = arith.mulf %65, %66 : vector<1x128xf32>
    %68 = arith.addf %64, %67 : vector<1x128xf32>
    %c4_38 = arith.constant 4 : index
    %c0_39 = arith.constant 0 : index
    %69 = vector.load %arg8[%c4_38, %c0_39] : memref<16x128xf32, #tpu.memory_space<vmem>>, vector<1x128xf32>
    tpu.vector_store %arg8[%c4_38, %c0_39], %68 {strides = array<i32>} : memref<16x128xf32, #tpu.memory_space<vmem>>, vector<1x128xf32>,
    %70 = arith.addf %58, %68 : vector<1x128xf32>
    %71 = arith.index_cast %arg1 : i32 to index
    %c5 = arith.constant 5 : index
    %72 = memref.load %arg2[%71, %c5] : memref<8x16xi32, #tpu.memory_space<smem>>
    %73 = arith.sitofp %72 : i32 to f32
    %c5_40 = arith.constant 5 : index
    %c0_41 = arith.constant 0 : index
    %74 = vector.load %arg8[%c5_40, %c0_41] : memref<16x128xf32, #tpu.memory_space<vmem>>, vector<1x128xf32>
    %cst_42 = arith.constant 0.980198681 : f32
    %75 = vector.broadcast %cst_42 : f32 to vector<1x128xf32>
    %76 = arith.mulf %74, %75 : vector<1x128xf32>
    %c5_43 = arith.constant 5 : index
    %c0_44 = arith.constant 0 : index
    %77 = vector.load %arg3[%c5_43, %c0_44] : memref<16x128xf32, #tpu.memory_space<vmem>>, vector<1x128xf32>
    %78 = vector.broadcast %73 : f32 to vector<1x128xf32>
    %79 = arith.mulf %77, %78 : vector<1x128xf32>
    %80 = arith.addf %76, %79 : vector<1x128xf32>
    %c5_45 = arith.constant 5 : index
    %c0_46 = arith.constant 0 : index
    %81 = vector.load %arg8[%c5_45, %c0_46] : memref<16x128xf32, #tpu.memory_space<vmem>>, vector<1x128xf32>
    tpu.vector_store %arg8[%c5_45, %c0_46], %80 {strides = array<i32>} : memref<16x128xf32, #tpu.memory_space<vmem>>, vector<1x128xf32>,
    %82 = arith.addf %70, %80 : vector<1x128xf32>
    %83 = arith.index_cast %arg1 : i32 to index
    %c6 = arith.constant 6 : index
    %84 = memref.load %arg2[%83, %c6] : memref<8x16xi32, #tpu.memory_space<smem>>
    %85 = arith.sitofp %84 : i32 to f32
    %c6_47 = arith.constant 6 : index
    %c0_48 = arith.constant 0 : index
    %86 = vector.load %arg8[%c6_47, %c0_48] : memref<16x128xf32, #tpu.memory_space<vmem>>, vector<1x128xf32>
    %cst_49 = arith.constant 0.980198681 : f32
    %87 = vector.broadcast %cst_49 : f32 to vector<1x128xf32>
    %88 = arith.mulf %86, %87 : vector<1x128xf32>
    %c6_50 = arith.constant 6 : index
    %c0_51 = arith.constant 0 : index
    %89 = vector.load %arg3[%c6_50, %c0_51] : memref<16x128xf32, #tpu.memory_space<vmem>>, vector<1x128xf32>
    %90 = vector.broadcast %85 : f32 to vector<1x128xf32>
    %91 = arith.mulf %89, %90 : vector<1x128xf32>
    %92 = arith.addf %88, %91 : vector<1x128xf32>
    %c6_52 = arith.constant 6 : index
    %c0_53 = arith.constant 0 : index
    %93 = vector.load %arg8[%c6_52, %c0_53] : memref<16x128xf32, #tpu.memory_space<vmem>>, vector<1x128xf32>
    tpu.vector_store %arg8[%c6_52, %c0_53], %92 {strides = array<i32>} : memref<16x128xf32, #tpu.memory_space<vmem>>, vector<1x128xf32>,
    %94 = arith.addf %82, %92 : vector<1x128xf32>
    %95 = arith.index_cast %arg1 : i32 to index
    %c7 = arith.constant 7 : index
    %96 = memref.load %arg2[%95, %c7] : memref<8x16xi32, #tpu.memory_space<smem>>
    %97 = arith.sitofp %96 : i32 to f32
    %c7_54 = arith.constant 7 : index
    %c0_55 = arith.constant 0 : index
    %98 = vector.load %arg8[%c7_54, %c0_55] : memref<16x128xf32, #tpu.memory_space<vmem>>, vector<1x128xf32>
    %cst_56 = arith.constant 0.980198681 : f32
    %99 = vector.broadcast %cst_56 : f32 to vector<1x128xf32>
    %100 = arith.mulf %98, %99 : vector<1x128xf32>
    %c7_57 = arith.constant 7 : index
    %c0_58 = arith.constant 0 : index
    %101 = vector.load %arg3[%c7_57, %c0_58] : memref<16x128xf32, #tpu.memory_space<vmem>>, vector<1x128xf32>
    %102 = vector.broadcast %97 : f32 to vector<1x128xf32>
    %103 = arith.mulf %101, %102 : vector<1x128xf32>
    %104 = arith.addf %100, %103 : vector<1x128xf32>
    %c7_59 = arith.constant 7 : index
    %c0_60 = arith.constant 0 : index
    %105 = vector.load %arg8[%c7_59, %c0_60] : memref<16x128xf32, #tpu.memory_space<vmem>>, vector<1x128xf32>
    tpu.vector_store %arg8[%c7_59, %c0_60], %104 {strides = array<i32>} : memref<16x128xf32, #tpu.memory_space<vmem>>, vector<1x128xf32>,
    %106 = arith.addf %94, %104 : vector<1x128xf32>
    %107 = arith.index_cast %arg1 : i32 to index
    %c8 = arith.constant 8 : index
    %108 = memref.load %arg2[%107, %c8] : memref<8x16xi32, #tpu.memory_space<smem>>
    %109 = arith.sitofp %108 : i32 to f32
    %c8_61 = arith.constant 8 : index
    %c0_62 = arith.constant 0 : index
    %110 = vector.load %arg8[%c8_61, %c0_62] : memref<16x128xf32, #tpu.memory_space<vmem>>, vector<1x128xf32>
    %cst_63 = arith.constant 0.980198681 : f32
    %111 = vector.broadcast %cst_63 : f32 to vector<1x128xf32>
    %112 = arith.mulf %110, %111 : vector<1x128xf32>
    %c8_64 = arith.constant 8 : index
    %c0_65 = arith.constant 0 : index
    %113 = vector.load %arg3[%c8_64, %c0_65] : memref<16x128xf32, #tpu.memory_space<vmem>>, vector<1x128xf32>
    %114 = vector.broadcast %109 : f32 to vector<1x128xf32>
    %115 = arith.mulf %113, %114 : vector<1x128xf32>
    %116 = arith.addf %112, %115 : vector<1x128xf32>
    %c8_66 = arith.constant 8 : index
    %c0_67 = arith.constant 0 : index
    %117 = vector.load %arg8[%c8_66, %c0_67] : memref<16x128xf32, #tpu.memory_space<vmem>>, vector<1x128xf32>
    tpu.vector_store %arg8[%c8_66, %c0_67], %116 {strides = array<i32>} : memref<16x128xf32, #tpu.memory_space<vmem>>, vector<1x128xf32>,
    %118 = arith.addf %106, %116 : vector<1x128xf32>
    %119 = arith.index_cast %arg1 : i32 to index
    %c9 = arith.constant 9 : index
    %120 = memref.load %arg2[%119, %c9] : memref<8x16xi32, #tpu.memory_space<smem>>
    %121 = arith.sitofp %120 : i32 to f32
    %c9_68 = arith.constant 9 : index
    %c0_69 = arith.constant 0 : index
    %122 = vector.load %arg8[%c9_68, %c0_69] : memref<16x128xf32, #tpu.memory_space<vmem>>, vector<1x128xf32>
    %cst_70 = arith.constant 0.980198681 : f32
    %123 = vector.broadcast %cst_70 : f32 to vector<1x128xf32>
    %124 = arith.mulf %122, %123 : vector<1x128xf32>
    %c9_71 = arith.constant 9 : index
    %c0_72 = arith.constant 0 : index
    %125 = vector.load %arg3[%c9_71, %c0_72] : memref<16x128xf32, #tpu.memory_space<vmem>>, vector<1x128xf32>
    %126 = vector.broadcast %121 : f32 to vector<1x128xf32>
    %127 = arith.mulf %125, %126 : vector<1x128xf32>
    %128 = arith.addf %124, %127 : vector<1x128xf32>
    %c9_73 = arith.constant 9 : index
    %c0_74 = arith.constant 0 : index
    %129 = vector.load %arg8[%c9_73, %c0_74] : memref<16x128xf32, #tpu.memory_space<vmem>>, vector<1x128xf32>
    tpu.vector_store %arg8[%c9_73, %c0_74], %128 {strides = array<i32>} : memref<16x128xf32, #tpu.memory_space<vmem>>, vector<1x128xf32>,
    %130 = arith.addf %118, %128 : vector<1x128xf32>
    %131 = arith.index_cast %arg1 : i32 to index
    %c10 = arith.constant 10 : index
    %132 = memref.load %arg2[%131, %c10] : memref<8x16xi32, #tpu.memory_space<smem>>
    %133 = arith.sitofp %132 : i32 to f32
    %c10_75 = arith.constant 10 : index
    %c0_76 = arith.constant 0 : index
    %134 = vector.load %arg8[%c10_75, %c0_76] : memref<16x128xf32, #tpu.memory_space<vmem>>, vector<1x128xf32>
    %cst_77 = arith.constant 0.980198681 : f32
    %135 = vector.broadcast %cst_77 : f32 to vector<1x128xf32>
    %136 = arith.mulf %134, %135 : vector<1x128xf32>
    %c10_78 = arith.constant 10 : index
    %c0_79 = arith.constant 0 : index
    %137 = vector.load %arg3[%c10_78, %c0_79] : memref<16x128xf32, #tpu.memory_space<vmem>>, vector<1x128xf32>
    %138 = vector.broadcast %133 : f32 to vector<1x128xf32>
    %139 = arith.mulf %137, %138 : vector<1x128xf32>
    %140 = arith.addf %136, %139 : vector<1x128xf32>
    %c10_80 = arith.constant 10 : index
    %c0_81 = arith.constant 0 : index
    %141 = vector.load %arg8[%c10_80, %c0_81] : memref<16x128xf32, #tpu.memory_space<vmem>>, vector<1x128xf32>
    tpu.vector_store %arg8[%c10_80, %c0_81], %140 {strides = array<i32>} : memref<16x128xf32, #tpu.memory_space<vmem>>, vector<1x128xf32>,
    %142 = arith.addf %130, %140 : vector<1x128xf32>
    %143 = arith.index_cast %arg1 : i32 to index
    %c11 = arith.constant 11 : index
    %144 = memref.load %arg2[%143, %c11] : memref<8x16xi32, #tpu.memory_space<smem>>
    %145 = arith.sitofp %144 : i32 to f32
    %c11_82 = arith.constant 11 : index
    %c0_83 = arith.constant 0 : index
    %146 = vector.load %arg8[%c11_82, %c0_83] : memref<16x128xf32, #tpu.memory_space<vmem>>, vector<1x128xf32>
    %cst_84 = arith.constant 0.980198681 : f32
    %147 = vector.broadcast %cst_84 : f32 to vector<1x128xf32>
    %148 = arith.mulf %146, %147 : vector<1x128xf32>
    %c11_85 = arith.constant 11 : index
    %c0_86 = arith.constant 0 : index
    %149 = vector.load %arg3[%c11_85, %c0_86] : memref<16x128xf32, #tpu.memory_space<vmem>>, vector<1x128xf32>
    %150 = vector.broadcast %145 : f32 to vector<1x128xf32>
    %151 = arith.mulf %149, %150 : vector<1x128xf32>
    %152 = arith.addf %148, %151 : vector<1x128xf32>
    %c11_87 = arith.constant 11 : index
    %c0_88 = arith.constant 0 : index
    %153 = vector.load %arg8[%c11_87, %c0_88] : memref<16x128xf32, #tpu.memory_space<vmem>>, vector<1x128xf32>
    tpu.vector_store %arg8[%c11_87, %c0_88], %152 {strides = array<i32>} : memref<16x128xf32, #tpu.memory_space<vmem>>, vector<1x128xf32>,
    %154 = arith.addf %142, %152 : vector<1x128xf32>
    %155 = arith.index_cast %arg1 : i32 to index
    %c12 = arith.constant 12 : index
    %156 = memref.load %arg2[%155, %c12] : memref<8x16xi32, #tpu.memory_space<smem>>
    %157 = arith.sitofp %156 : i32 to f32
    %c12_89 = arith.constant 12 : index
    %c0_90 = arith.constant 0 : index
    %158 = vector.load %arg8[%c12_89, %c0_90] : memref<16x128xf32, #tpu.memory_space<vmem>>, vector<1x128xf32>
    %cst_91 = arith.constant 0.980198681 : f32
    %159 = vector.broadcast %cst_91 : f32 to vector<1x128xf32>
    %160 = arith.mulf %158, %159 : vector<1x128xf32>
    %c12_92 = arith.constant 12 : index
    %c0_93 = arith.constant 0 : index
    %161 = vector.load %arg3[%c12_92, %c0_93] : memref<16x128xf32, #tpu.memory_space<vmem>>, vector<1x128xf32>
    %162 = vector.broadcast %157 : f32 to vector<1x128xf32>
    %163 = arith.mulf %161, %162 : vector<1x128xf32>
    %164 = arith.addf %160, %163 : vector<1x128xf32>
    %c12_94 = arith.constant 12 : index
    %c0_95 = arith.constant 0 : index
    %165 = vector.load %arg8[%c12_94, %c0_95] : memref<16x128xf32, #tpu.memory_space<vmem>>, vector<1x128xf32>
    tpu.vector_store %arg8[%c12_94, %c0_95], %164 {strides = array<i32>} : memref<16x128xf32, #tpu.memory_space<vmem>>, vector<1x128xf32>,
    %166 = arith.addf %154, %164 : vector<1x128xf32>
    %167 = arith.index_cast %arg1 : i32 to index
    %c13 = arith.constant 13 : index
    %168 = memref.load %arg2[%167, %c13] : memref<8x16xi32, #tpu.memory_space<smem>>
    %169 = arith.sitofp %168 : i32 to f32
    %c13_96 = arith.constant 13 : index
    %c0_97 = arith.constant 0 : index
    %170 = vector.load %arg8[%c13_96, %c0_97] : memref<16x128xf32, #tpu.memory_space<vmem>>, vector<1x128xf32>
    %cst_98 = arith.constant 0.980198681 : f32
    %171 = vector.broadcast %cst_98 : f32 to vector<1x128xf32>
    %172 = arith.mulf %170, %171 : vector<1x128xf32>
    %c13_99 = arith.constant 13 : index
    %c0_100 = arith.constant 0 : index
    %173 = vector.load %arg3[%c13_99, %c0_100] : memref<16x128xf32, #tpu.memory_space<vmem>>, vector<1x128xf32>
    %174 = vector.broadcast %169 : f32 to vector<1x128xf32>
    %175 = arith.mulf %173, %174 : vector<1x128xf32>
    %176 = arith.addf %172, %175 : vector<1x128xf32>
    %c13_101 = arith.constant 13 : index
    %c0_102 = arith.constant 0 : index
    %177 = vector.load %arg8[%c13_101, %c0_102] : memref<16x128xf32, #tpu.memory_space<vmem>>, vector<1x128xf32>
    tpu.vector_store %arg8[%c13_101, %c0_102], %176 {strides = array<i32>} : memref<16x128xf32, #tpu.memory_space<vmem>>, vector<1x128xf32>,
    %178 = arith.addf %166, %176 : vector<1x128xf32>
    %179 = arith.index_cast %arg1 : i32 to index
    %c14 = arith.constant 14 : index
    %180 = memref.load %arg2[%179, %c14] : memref<8x16xi32, #tpu.memory_space<smem>>
    %181 = arith.sitofp %180 : i32 to f32
    %c14_103 = arith.constant 14 : index
    %c0_104 = arith.constant 0 : index
    %182 = vector.load %arg8[%c14_103, %c0_104] : memref<16x128xf32, #tpu.memory_space<vmem>>, vector<1x128xf32>
    %cst_105 = arith.constant 0.980198681 : f32
    %183 = vector.broadcast %cst_105 : f32 to vector<1x128xf32>
    %184 = arith.mulf %182, %183 : vector<1x128xf32>
    %c14_106 = arith.constant 14 : index
    %c0_107 = arith.constant 0 : index
    %185 = vector.load %arg3[%c14_106, %c0_107] : memref<16x128xf32, #tpu.memory_space<vmem>>, vector<1x128xf32>
    %186 = vector.broadcast %181 : f32 to vector<1x128xf32>
    %187 = arith.mulf %185, %186 : vector<1x128xf32>
    %188 = arith.addf %184, %187 : vector<1x128xf32>
    %c14_108 = arith.constant 14 : index
    %c0_109 = arith.constant 0 : index
    %189 = vector.load %arg8[%c14_108, %c0_109] : memref<16x128xf32, #tpu.memory_space<vmem>>, vector<1x128xf32>
    tpu.vector_store %arg8[%c14_108, %c0_109], %188 {strides = array<i32>} : memref<16x128xf32, #tpu.memory_space<vmem>>, vector<1x128xf32>,
    %190 = arith.addf %178, %188 : vector<1x128xf32>
    %191 = arith.index_cast %arg1 : i32 to index
    %c15 = arith.constant 15 : index
    %192 = memref.load %arg2[%191, %c15] : memref<8x16xi32, #tpu.memory_space<smem>>
    %193 = arith.sitofp %192 : i32 to f32
    %c15_110 = arith.constant 15 : index
    %c0_111 = arith.constant 0 : index
    %194 = vector.load %arg8[%c15_110, %c0_111] : memref<16x128xf32, #tpu.memory_space<vmem>>, vector<1x128xf32>
    %cst_112 = arith.constant 0.980198681 : f32
    %195 = vector.broadcast %cst_112 : f32 to vector<1x128xf32>
    %196 = arith.mulf %194, %195 : vector<1x128xf32>
    %c15_113 = arith.constant 15 : index
    %c0_114 = arith.constant 0 : index
    %197 = vector.load %arg3[%c15_113, %c0_114] : memref<16x128xf32, #tpu.memory_space<vmem>>, vector<1x128xf32>
    %198 = vector.broadcast %193 : f32 to vector<1x128xf32>
    %199 = arith.mulf %197, %198 : vector<1x128xf32>
    %200 = arith.addf %196, %199 : vector<1x128xf32>
    %c15_115 = arith.constant 15 : index
    %c0_116 = arith.constant 0 : index
    %201 = vector.load %arg8[%c15_115, %c0_116] : memref<16x128xf32, #tpu.memory_space<vmem>>, vector<1x128xf32>
    tpu.vector_store %arg8[%c15_115, %c0_116], %200 {strides = array<i32>} : memref<16x128xf32, #tpu.memory_space<vmem>>, vector<1x128xf32>,
    %202 = arith.addf %190, %200 : vector<1x128xf32>
    %203 = arith.addf %5, %202 : vector<1x128xf32>
    %cst_117 = arith.constant 1.000000e+00 : f32
    %204 = vector.broadcast %cst_117 : f32 to vector<1x128xf32>
    %205 = arith.mulf %9, %204 : vector<1x128xf32>
    %206 = arith.subf %203, %205 : vector<1x128xf32>
    %c0_118 = arith.constant 0 : index
    %c0_119 = arith.constant 0 : index
    %207 = vector.load %arg9[%c0_118, %c0_119] : memref<1x128xf32, #tpu.memory_space<vmem>>, vector<1x128xf32>
    tpu.vector_store %arg9[%c0_118, %c0_119], %206 {strides = array<i32>} : memref<1x128xf32, #tpu.memory_space<vmem>>, vector<1x128xf32>,
    %c0_120 = arith.constant 0 : index
    %c0_121 = arith.constant 0 : index
    %c0_122 = arith.constant 0 : index
    %208 = vector.load %arg6[%c0_120, %c0_121, %c0_122] : memref<1x1x128xf32, #tpu.memory_space<vmem>>, vector<1x1x128xf32>
    %209 = vector.shape_cast %208 : vector<1x1x128xf32> to vector<1x128xf32>
    %210 = vector.shape_cast %9 : vector<1x128xf32> to vector<1x1x128xf32>
    tpu.vector_store %arg6[%c0_120, %c0_121, %c0_122], %210 {strides = array<i32>} : memref<1x1x128xf32, #tpu.memory_space<vmem>>, vector<1x1x128xf32>,
    %c0_123 = arith.constant 0 : index
    %c0_124 = arith.constant 0 : index
    %c0_125 = arith.constant 0 : index
    %211 = vector.load %arg7[%c0_123, %c0_124, %c0_125] : memref<1x1x128xf32, #tpu.memory_space<vmem>>, vector<1x1x128xf32>
    %212 = vector.shape_cast %211 : vector<1x1x128xf32> to vector<1x128xf32>
    %213 = vector.shape_cast %206 : vector<1x128xf32> to vector<1x1x128xf32>
    tpu.vector_store %arg7[%c0_123, %c0_124, %c0_125], %213 {strides = array<i32>} : memref<1x1x128xf32, #tpu.memory_space<vmem>>, vector<1x1x128xf32>,
    return
  }
  func.func @transform_0(%arg0: i32, %arg1: i32, %arg2: memref<8x16xi32, #tpu.memory_space<smem>>) -> (i32, i32) {
    %c0_i32 = arith.constant 0 : i32
    %c0_i32_0 = arith.constant 0 : i32
    return %c0_i32, %arg0 : i32, i32
  }
  func.func @transform_1(%arg0: i32, %arg1: i32, %arg2: memref<8x16xi32, #tpu.memory_space<smem>>) -> (i32, i32) {
    %c0_i32 = arith.constant 0 : i32
    %c0_i32_0 = arith.constant 0 : i32
    return %c0_i32, %arg0 : i32, i32
  }
  func.func @transform_2(%arg0: i32, %arg1: i32, %arg2: memref<8x16xi32, #tpu.memory_space<smem>>) -> (i32, i32) {
    %c0_i32 = arith.constant 0 : i32
    %c0_i32_0 = arith.constant 0 : i32
    return %c0_i32, %arg0 : i32, i32
  }
  func.func @transform_3(%arg0: i32, %arg1: i32, %arg2: memref<8x16xi32, #tpu.memory_space<smem>>) -> (i32, i32, i32) {
    %c0_i32 = arith.constant 0 : i32
    %c0_i32_0 = arith.constant 0 : i32
    return %arg1, %c0_i32, %arg0 : i32, i32, i32
  }
  func.func @transform_4(%arg0: i32, %arg1: i32, %arg2: memref<8x16xi32, #tpu.memory_space<smem>>) -> (i32, i32, i32) {
    %c0_i32 = arith.constant 0 : i32
    %c0_i32_0 = arith.constant 0 : i32
    return %arg1, %c0_i32, %arg0 : i32, i32, i32
  }
  func.func @transform_5(%arg0: i32, %arg1: i32, %arg2: memref<8x16xi32, #tpu.memory_space<smem>>) -> (i32, i32) {
    %c0_i32 = arith.constant 0 : i32
    %c0_i32_0 = arith.constant 0 : i32
    return %c0_i32, %arg0 : i32, i32
  }
}

</mosaic_0001>

<bundles_post_ra>
// kernel: forward.1
= control target key start
LH: loop header
LB: loop body
LE: loop exit
PB: predicated region body
PF: predicated region fallthrough
CT: control target
= control target key end

     0   :  { %s1441_s0 = inlined_call_operand.vmem [shape: s32[8,16], index: 0, kind: input, shape index: {}]   ;;  %s1442_s1 = inlined_call_operand.hbm [shape: f32[16,256], index: 1, kind: input, shape index: {}]   ;;  %s1443_s2 = inlined_call_operand.hbm [shape: f32[16,256], index: 2, kind: input, shape index: {}]   ;;  %s1444_s3 = inlined_call_operand.vmem [shape: f32[1,256], index: 3, kind: input, shape index: {}]   ;;  %s1445_s4 = inlined_call_operand.vmem [shape: f32[8,1,256], index: 4, kind: output, shape index: {0}]   ;;  %s1446_s5 = inlined_call_operand.vmem [shape: f32[8,1,256], index: 5, kind: output, shape index: {1}]   ;;  %s1447_s6 = inlined_call_operand.hbm [shape: f32[16,256], index: 6, kind: output, shape index: {2}]  }
   0x1   :  { %1454 = sst [smem:[#allocation21_spill]] %s1442_s1  ;;  %s12_s23 = sshll.u32 %s1441_s0, 4  ;;  %s13_s23 = int_to_ptr.vmem [resolvable:$true] %s12_s23 }
   0x2   :  { %s870_s24 = scalar_lea.vmem %s13_s23, 128  ;;  %p875_p1 = scmp.lt.s32.totalorder %s13_s23, %s13_s23 }
   0x3   :  { %p871_p0 = scmp.ne.s32.totalorder %s13_s23, %s870_s24  ;;  %p876_p2 = scmp.lt.s32.totalorder %s870_s24, %s870_s24 }
   0x5   :  { %p877_p3 = por %p876_p2, %p875_p1 }
   0x7   :  { %p878_p4 = pnand %p877_p3, %p871_p0 }
   0x9   :  { %881 = shalt.err (!%p878_p4)  }
   0xa   :  { %s1042_s25 = smov [#allocation4]  }
   0xb   :  { %15 = dma.vmem_to_smem %s13_s23, 128, %s1042_s25, [#allocation3] }
   0xc   :  { %996 = dma.done.wait [#allocation3], 128 }
   0xd   :  { %997 = vsyncadd [#allocation3], 4294967168 }
   0xe   :  { %17 = sfence }
   0xf   :  { %18 = vsyncpa [#allocation6], 0 }
  0x10   :  { %20 = vsyncpa [#allocation6 + $0x1], 0 }
  0x11   :  { %21 = vsyncpa [#allocation9], 0 }
  0x12   :  { %23 = vsyncpa [#allocation9 + $0x1], 0 }
  0x13   :  { %24 = vsyncpa [#allocation7], 0 }
  0x14   :  { %26 = vsyncpa [#allocation7 + $0x1], 0  ;;  %s1091_s0 = smov 0   ;;  %s1093_s26 = smov 0  }
  0x15   :  { %s1095_s27 = smov 0   ;;  %s1097_s28 = smov 0  }
  0x16   :  { %s1099_s29 = smov 0   ;;  %s1101_s30 = smov 0  }
  0x17   :  { %s1103_s7 = smov 0   ;;  %s1105_s8 = smov 0  }
  0x18 LB: > { %1455 = sst [smem:[#allocation15_spill]] %s1020_s27  ;;  %s758_s9 = sadd.s32 4294967295, %s1040_s8   ;;  %s1040_s8 = sphi %s1105_s8, %s32_s8   ;;  %s1036_s7 = sphi %s1103_s7, %s1479_s7   ;;  %s1032_s30 = sphi %s1101_s30, %s1474_s30   ;;  %s1028_s29 = sphi %s1099_s29, %s1478_s29   ;;  %s1024_s28 = sphi %s1097_s28, %s1473_s28   ;;  %s1020_s27 = sphi %s1095_s27, %s1472_s27   ;;  %s1016_s26 = sphi %s1093_s26, %s1477_s26   ;;  %s1012_s0 = sphi %s1091_s0, %s1476_s0  }
  0x19   : > { %1456 = sst [smem:[#allocation16_spill]] %s1032_s30  ;;  %s759_s10 = sadd.s32 4294967294, %s1040_s8  }
  0x1a   : > { %s41_s11 = sadd.s32 1, %s1032_s30  ;;  %s44_s12 = sadd.s32 1, %s1036_s7 }
  0x1b   : > { %p42_p5 = scmp.ge.s32.totalorder %s41_s11, 8  ;;  %s51_s13 = sadd.s32 1, %s1020_s27 }
  0x1c   : > { %p58_p6 = scmp.ne.s32.totalorder %s1020_s27, %s1016_s26  ;;  %p59_p7 = scmp.eq.s32.totalorder %s1040_s8, 0 }
  0x1d   : > { %s1481_s11 = smov (%p42_p5, %s41_s11), 0  ;;  %s1483_s12 = smov (!%p42_p5, %s44_s12), %s1036_s7 }
  0x1e   : > { %1457 = sst [smem:[#allocation17_spill]] %s1481_s11  ;;  %p1142_p8 = por %p59_p7, %p58_p6 }
  0x1f   : > { %p64_p9 = scmp.ne.s32.totalorder %s1016_s26, %s1012_s0  ;;  %p46_p10 = scmp.ge.s32.totalorder %s1483_s12, 2 }
  0x20   : > { %p65_p11 = scmp.eq.s32.totalorder %s758_s9, 0  ;;  %p196_p12 = scmp.eq.s32.totalorder %s758_s9, 15 }
  0x21   : > { %p202_p13 = scmp.eq.s32.totalorder %s759_s10, 15  ;;  %s1485_s12 = smov (%p46_p10, %s1483_s12), 0 }
  0x22   : > { %1459 = sst [smem:[#allocation18_spill]] %s1485_s12  ;;  %p1150_p0 = por %p65_p11, %p64_p9 }
  0x23   : > { %p1154_p1 = por %p196_p12, %p58_p6  ;;  %s48_s17 = ssub.s32 %s1036_s7, %s1485_s12 }
  0x24   : > { %p1160_p2 = por %p202_p13, %p64_p9  ;;  %p49_p3 = scmp.eq.s32.totalorder %s48_s17, 0 }
  0x25   : > { %p796_p4 = scmp.lt.s32.totalorder %s1040_s8, 16  ;;  %s1166_s19 = sand.u32 1, %s1020_s27  }
  0x26   : > { %s1462_s18 = scalar_select %p1160_p2, 1, 0 }
  0x27   : > { %s1169_s20 = scalar_select %p49_p3, %s1020_s27, %s51_s13  }
  0x28   : > { %1463 = sst [smem:[#allocation19_spill]] %s1462_s18  ;;  %s1449_s21 = sshll.u32 %s1166_s19, 4 }
  0x29   : > { %1464 = sst [smem:[#allocation20_spill]] %s1169_s20  ;;  %s1450_s22 = sshll.u32 %s1036_s7, 7 }
  0x2a   : > { %s1465_s1 = sld [smem:[#allocation21_spill]]  ;;  %s226_s9 = scalar_lea.vmem [#allocation5], %s1449_s21 }
  0x2b   : > { %s232_s10 = sshll.u32 %s226_s9, 4  ;;  %p1182_p5 = pnand %p796_p4, %p1142_p8  ;;  %s233_s10 = int_to_ptr.vmem [resolvable:$true] %s232_s10 }
  0x2c   : > { %s223_s13 = scalar_lea.sflag [#allocation6], %s1166_s19  ;;  %s895_s12 = scalar_lea.vmem %s233_s10, 256 }
  0x2d   : > { %p884_p6 = pneg %p1182_p5  ;;  %p896_p7 = scmp.ne.s32.totalorder %s233_s10, %s895_s12 }
  0x2e   : > { %s1043_s23 = smov [#allocation5]  }
  0x2f   : > { %p898_p9 = pnand %p896_p7, %p884_p6  ;;  %s900_s24 = sshll.u32 %s1043_s23, 4  ;;  %s901_s24 = int_to_ptr.vmem [resolvable:$false] %s900_s24 }
  0x30   : > { %s231_s25 = scalar_lea.hbm %s1465_s1, %s1450_s22  ;;  %s902_s9 = scalar_lea.vmem %s901_s24, 512 }
  0x31   : > { %p899_p10 = pneg %p898_p9  ;;  %p903_p11 = scmp.lt.s32.totalorder %s233_s10, %s901_s24 }
  0x32   : > { %p904_p8 = scmp.lt.s32.totalorder %s902_s9, %s895_s12 }
  0x34   : > { %p905_p12 = por %p904_p8, %p903_p11 }
  0x36   : > { %p906_p13 = pnand %p905_p12, %p899_p10 }
  0x38   : > { %909 = shalt.err (!%p906_p13)
}
  0x39   : > { %s1044_s14 = smov 256   ;;  %s1045_s21 = smov 128  }
  0x3a   : > { %s1046_s22 = smov 8   ;;  %p766_p3 = scmp.ge.s32.totalorder %s1040_s8, 1 }
  0x3b   : > { %788 = dma.hbm_to_vmem [thread:$0]  (!%p1182_p5), %s231_s25, 256, %s233_s10, %s223_s13, %s1044_s14, %s1045_s21, %s1046_s22  }
  0x3c   : > { %p266_p4 = scmp.lt.s32.totalorder %s1040_s8, 17  ;;  %s1468_s23 = sshll.u32 %s1036_s7, 7 }
  0x3d   : > { %s251_s1 = scalar_lea.hbm %s1443_s2, %s1468_s23  ;;  %s1469_s11 = sshll.u32 %s1166_s19, 4 }
  0x3e   : > { %p1197_p7 = pnand %p766_p3, %p266_p4  ;;  %s246_s30 = scalar_lea.vmem [#allocation8], %s1469_s11 }
  0x3f   : > { %s252_s20 = sshll.u32 %s246_s30, 4  ;;  %s243_s27 = scalar_lea.sflag [#allocation9], %s1166_s19  ;;  %s253_s20 = int_to_ptr.vmem [resolvable:$true] %s252_s20 }
  0x40   : > { %s923_s18 = scalar_lea.vmem %s253_s20, 256  ;;  %s1047_s25 = smov [#allocation8]  }
  0x41   : > { %p924_p9 = scmp.ne.s32.totalorder %s253_s20, %s923_s18  ;;  %s928_s10 = sshll.u32 %s1047_s25, 4  ;;  %s929_s10 = int_to_ptr.vmem [resolvable:$false] %s928_s10 }
  0x42   : > { %s930_s13 = scalar_lea.vmem %s929_s10, 512  ;;  %p931_p8 = scmp.lt.s32.totalorder %s253_s20, %s929_s10 }
  0x43   : > { %p926_p10 = pnand %p924_p9, %p884_p6  ;;  %p932_p12 = scmp.lt.s32.totalorder %s930_s13, %s923_s18 }
  0x45   : > { %p927_p11 = pneg %p926_p10  ;;  %p933_p13 = por %p932_p12, %p931_p8 }
  0x47   : > { %p934_p3 = pnand %p933_p13, %p927_p11 }
  0x49   : > { %937 = shalt.err (!%p934_p3)
}
  0x4a   : > { %791 = dma.hbm_to_vmem [thread:$0]  (!%p1182_p5), %s251_s1, 256, %s253_s20, %s243_s27, %s1044_s14, %s1045_s21, %s1046_s22  }
  0x4b   : > { %270 = sbr.rel (%p1197_p7) target bundleno = 157 (0x9d), region = 32  ;;  %s1218_s30 = sand.u32 (!%p1197_p7), 1, %s1016_s26  }
  0x4c   : > { %s767_s11 = sshll.u32 (!%p1197_p7), %s1218_s30, 4  ;;  %s273_s19 = scalar_lea.sflag (!%p1197_p7), [#allocation6], %s1218_s30 }
  0x4d   : > { %s1222_s23 = scalar_lea.vmem (!%p1197_p7), [#allocation5], %s767_s11 }
  0x50   : > { %999 = dma.done.wait (%p1150_p0), %s273_s19, 256  }
  0x51   : > { %1001 = vsyncadd (%p1150_p0), %s273_s19, 4294967040  ;;  %s282_s1 = scalar_lea.sflag [#allocation9], %s1218_s30  ;;  %s285_s27 = scalar_lea.vmem [#allocation8], %s767_s11 }
  0x52   : > { %1003 = dma.done.wait (%p1150_p0), %s282_s1, 256  }
  0x53   : > { %1005 = vsyncadd (%p1150_p0), %s282_s1, 4294967040  ;;  %p334_p5 = scmp.lt.s32.totalorder %s1028_s29, 1  ;;  %p337_p6 = scmp.lt.s32.totalorder %s1024_s28, 7 }
  0x54   : > { %s1250_s19 = scalar_lea.vmem [#allocation10], %s767_s11  ;;  %p772_p0 = scmp.ne.s32.totalorder %s1024_s28, 0 }
  0x55   : > { %s335_s18 = scalar_select %p334_p5, %s1028_s29, 1 }
  0x56   : > { %s338_s20 = scalar_select %p337_p6, %s1024_s28, 7 }
  0x57   : > { %s336_s17 = scalar_lea.vmem %s1444_s3, %s335_s18  ;;  %354 = sbr.rel (%p772_p0) target bundleno = 95 (0x5f), region = 44 }
  0x58   : > { %s770_s14 = sshll.u32 %s338_s20, 1 }
  0x59   : > { %s1240_s12 = sadd.s32 %s770_s14, %s335_s18 }
  0x5a   : > { %s343_s15 = scalar_lea.vmem %s1445_s4, %s1240_s12  ;;  %s350_s13 = scalar_lea.vmem %s1446_s5, %s1240_s12 }
  0x5c   : > { %v355_v0 = vld [vmem:[%s285_s27] sm:$0xff]  ;;  %v356_v1 = vld [vmem:[%s285_s27 + $0x8] sm:$0xff] }
  0x5d   : > { %v359_v2 = vld [vmem:[%s336_s17] sm:$0x1]  ;;  %357 = vst [vmem:[%s1250_s19] sm:$0xff] %v355_v0  ;;  %358 = vst [vmem:[%s1250_s19 + $0x8] sm:$0xff] %v356_v1 }
  0x5e   : > { %360 = vst [vmem:[#allocation2] sm:$0x1] %v359_v2 }
  0x5f PF: > { %s1256_s1 = sshll.u32 %s1024_s28, 7  ;;  %v371_v5 = vld [vmem:[%s1222_s23] sm:$0x1]  ;;  %v382_v10 = vld [vmem:[%s1222_s23 + $0x1] sm:$0x1] }
  0x60   : > { %s367_s11 = sld [smem:[#allocation4 + %s1256_s1]]  ;;  %s377_s27 = sadd.s32 1, %s1256_s1  ;;  %v393_v11 = vld [vmem:[%s1222_s23 + $0x2] sm:$0x1]  ;;  %v404_v19 = vld [vmem:[%s1222_s23 + $0x3] sm:$0x1] }
  0x61   : > { %s1260_s18 = sld [smem:[#allocation4 + %s377_s27]]  ;;  %s388_s20 = sadd.s32 2, %s1256_s1  ;;  %v415_v24 = vld [vmem:[%s1222_s23 + $0x4] sm:$0x1]  ;;  %v426_v29 = vld [vmem:[%s1222_s23 + $0x5] sm:$0x1] }
  0x62   : > { %s1264_s21 = sld [smem:[#allocation4 + %s388_s20]]  ;;  %s399_s28 = sadd.s32 3, %s1256_s1  ;;  %v437_v38 = vld [vmem:[%s1222_s23 + $0x6] sm:$0x1]  ;;  %v448_v43 = vld [vmem:[%s1222_s23 + $0x7] sm:$0x1] }
  0x63   : > { %s1268_s22 = sld [smem:[#allocation4 + %s399_s28]]  ;;  %s410_s17 = sadd.s32 4, %s1256_s1  ;;  %v459_v53 = vld [vmem:[%s1222_s23 + $0x8] sm:$0x1]  ;;  %v470_v56 = vld [vmem:[%s1222_s23 + $0x9] sm:$0x1] }
  0x64   : > { %v369_v3 = vld [vmem:[%s1250_s19] sm:$0x1]  ;;  %v380_v4 = vld [vmem:[%s1250_s19 + $0x1] sm:$0x1]  ;;  %v391_v6 = vld [vmem:[%s1250_s19 + $0x2] sm:$0x1] }
  0x65   : > { %s1273_s14 = sld [smem:[#allocation4 + %s410_s17]]  ;;  %s421_s24 = sadd.s32 5, %s1256_s1  ;;  %v370_v7 = vmul.f32 0.9801987, %v369_v3  ;;  %v402_v8 = vld [vmem:[%s1250_s19 + $0x3] sm:$0x1] }
  0x66   : > { %s1277_s9 = sld [smem:[#allocation4 + %s421_s24]]  ;;  %s432_s25 = sadd.s32 6, %s1256_s1  ;;  %v381_v9 = vmul.f32 0.9801987, %v380_v4  ;;  %v392_v12 = vmul.f32 0.9801987, %v391_v6 }
  0x67   : > { %s368_s10 = scvt.s32.f32 %s367_s11  ;;  %s379_s27 = scvt.s32.f32 %s1260_s18  ;;  %v413_v13 = vld [vmem:[%s1250_s19 + $0x4] sm:$0x1]  ;;  %v403_v15 = vmul.f32 0.9801987, %v402_v8  ;;  %v424_v16 = vld [vmem:[%s1250_s19 + $0x5] sm:$0x1] }
  0x68   : > { %s1284_s20 = sld [smem:[#allocation4 + %s432_s25]]  ;;  %s390_s28 = scvt.s32.f32 %s1264_s21  ;;  %v435_v20 = vld [vmem:[%s1250_s19 + $0x6] sm:$0x1]  ;;  %v414_v23 = vmul.f32 0.9801987, %v413_v13 }
  0x69   : > { %v372_v14 = vstv %s368_s10  ;;  %s443_s17 = sadd.s32 7, %s1256_s1  ;;  %v383_v18 = vstv %s379_s27  ;;  %s401_s11 = scvt.s32.f32 %s1268_s22  ;;  %v425_v28 = vmul.f32 0.9801987, %v424_v16  ;;  %v436_v33 = vmul.f32 0.9801987, %v435_v20 }
  0x6a   : > { %v373_v17 = vmul.f32 %v372_v14, %v371_v5  ;;  %s1292_s18 = sld [smem:[#allocation4 + %s443_s17]]  ;;  %v384_v21 = vmul.f32 %v383_v18, %v382_v10  ;;  %v394_v22 = vstv %s390_s28  ;;  %s454_s21 = sadd.s32 8, %s1256_s1  ;;  %v446_v34 = vld [vmem:[%s1250_s19 + $0x7] sm:$0x1]  ;;  %v457_v39 = vld [vmem:[%s1250_s19 + $0x8] sm:$0x1] }
  0x6b   : > { %s412_s24 = scvt.s32.f32 %s1273_s14  ;;  %v395_v26 = vmul.f32 %v394_v22, %v393_v11  ;;  %v405_v27 = vstv %s401_s11  ;;  %s1299_s22 = sld [smem:[#allocation4 + %s454_s21]]  ;;  %v468_v44 = vld [vmem:[%s1250_s19 + $0x9] sm:$0x1]  ;;  %v447_v47 = vmul.f32 0.9801987, %v446_v34 }
  0x6c   : > { %v374_v25 = vadd.f32 %v373_v17, %v370_v7  ;;  %s423_s25 = scvt.s32.f32 %s1277_s9  ;;  %v385_v30 = vadd.f32 %v384_v21, %v381_v9  ;;  %v406_v31 = vmul.f32 %v405_v27, %v404_v19  ;;  %s465_s14 = sadd.s32 9, %s1256_s1  ;;  %v479_v48 = vld [vmem:[%s1250_s19 + $0xa] sm:$0x1]  ;;  %v458_v52 = vmul.f32 0.9801987, %v457_v39 }
  0x6d   : > { %v416_v32 = vstv %s412_s24  ;;  %s476_s10 = sadd.s32 10, %s1256_s1  ;;  %v396_v35 = vadd.f32 %v395_v26, %v392_v12  ;;  %s1308_s27 = sld [smem:[#allocation4 + %s465_s14]]  ;;  %v469_v55 = vmul.f32 0.9801987, %v468_v44  ;;  %v490_v57 = vld [vmem:[%s1250_s19 + $0xb] sm:$0x1] }
  0x6e   : > { %375 = vst [vmem:[%s1250_s19] sm:$0x1] %v374_v25  ;;  %v417_v36 = vmul.f32 %v416_v32, %v415_v24  ;;  %v427_v37 = vstv %s423_s25  ;;  %s434_s9 = scvt.s32.f32 %s1284_s20  ;;  %386 = vst [vmem:[%s1250_s19 + $0x1] sm:$0x1] %v385_v30  ;;  %v387_v40 = vadd.f32 %v385_v30, %v374_v25  ;;  %v407_v41 = vadd.f32 %v406_v31, %v403_v15  ;;  %s1313_s28 = sld [smem:[#allocation4 + %s476_s10]]  ;;  %v501_v62 = vld [vmem:[%s1250_s19 + $0xc] sm:$0x1] }
  0x6f   : > { %v428_v42 = vmul.f32 %v427_v37, %v426_v29  ;;  %s487_s17 = sadd.s32 11, %s1256_s1  ;;  %397 = vst [vmem:[%s1250_s19 + $0x2] sm:$0x1] %v396_v35  ;;  %s498_s24 = sadd.s32 12, %s1256_s1  ;;  %v480_v61 = vmul.f32 0.9801987, %v479_v48 }
  0x70   : > { %v418_v45 = vadd.f32 %v417_v36, %v414_v23  ;;  %v438_v46 = vstv %s434_s9  ;;  %s445_s20 = scvt.s32.f32 %s1292_s18  ;;  %s1319_s11 = sld [smem:[#allocation4 + %s487_s17]]  ;;  %v398_v49 = vadd.f32 %v396_v35, %v387_v40  ;;  %408 = vst [vmem:[%s1250_s19 + $0x3] sm:$0x1] %v407_v41  ;;  %v481_v0 = vld [vmem:[%s1222_s23 + $0xa] sm:$0x1]  ;;  %v1048_v36 = vmov 0.0  }
  0x71   : > { %v429_v50 = vadd.f32 %v428_v42, %v425_v28  ;;  %v439_v51 = vmul.f32 %v438_v46, %v437_v38  ;;  %s509_s21 = sadd.s32 13, %s1256_s1  ;;  %s456_s18 = scvt.s32.f32 %s1299_s22  ;;  %v492_v1 = vld [vmem:[%s1222_s23 + $0xb] sm:$0x1]  ;;  %v491_v5 = vmul.f32 0.9801987, %v490_v57 }
  0x72   : > { %419 = vst [vmem:[%s1250_s19 + $0x4] sm:$0x1] %v418_v45  ;;  %v449_v54 = vstv %s445_s20  ;;  %s1329_s25 = sld [smem:[#allocation4 + %s498_s24]]  ;;  %v409_v58 = vadd.f32 %v407_v41, %v398_v49  ;;  %s520_s22 = sadd.s32 14, %s1256_s1  ;;  %v512_v6 = vld [vmem:[%s1250_s19 + $0xd] sm:$0x1] }
  0x73   : > { %430 = vst [vmem:[%s1250_s19 + $0x5] sm:$0x1] %v429_v50  ;;  %v440_v59 = vadd.f32 %v439_v51, %v436_v33  ;;  %v450_v60 = vmul.f32 %v449_v54, %v448_v43  ;;  %s1333_s14 = sld [smem:[#allocation4 + %s509_s21]]  ;;  %v460_v63 = vstv %s456_s18  ;;  %s467_s10 = scvt.s32.f32 %s1308_s27  ;;  %v502_v8 = vmul.f32 0.9801987, %v501_v62 }
  0x74   : > { %s1339_s9 = sld [smem:[#allocation4 + %s520_s22]]  ;;  %v420_v2 = vadd.f32 %v418_v45, %v409_v58  ;;  %v461_v4 = vmul.f32 %v460_v63, %v459_v53  ;;  %s478_s17 = scvt.s32.f32 %s1313_s28  ;;  %v523_v9 = vld [vmem:[%s1250_s19 + $0xe] sm:$0x1]  ;;  %v361_v14 = vld [vmem:[#allocation2] sm:$0x1] }
  0x75   : > { %441 = vst [vmem:[%s1250_s19 + $0x6] sm:$0x1] %v440_v59  ;;  %v451_v3 = vadd.f32 %v450_v60, %v447_v47  ;;  %s531_s20 = sadd.s32 15, %s1256_s1  ;;  %v471_v7 = vstv %s467_s10  ;;  %v503_v17 = vld [vmem:[%s1222_s23 + $0xc] sm:$0x1]  ;;  %s776_s18 = sshll.u32 %s1028_s29, 7 }
  0x76   : > { %s489_s24 = scvt.s32.f32 %s1319_s11  ;;  %s1347_s27 = sld [smem:[#allocation4 + %s531_s20]]  ;;  %v431_v10 = vadd.f32 %v429_v50, %v420_v2  ;;  %v462_v11 = vadd.f32 %v461_v4, %v458_v52  ;;  %v472_v12 = vmul.f32 %v471_v7, %v470_v56  ;;  %v482_v13 = vstv %s478_s17  ;;  %v514_v23 = vld [vmem:[%s1222_s23 + $0xd] sm:$0x1]  ;;  %v525_v27 = vld [vmem:[%s1222_s23 + $0xe] sm:$0x1] }
  0x77   : > { %452 = vst [vmem:[%s1250_s19 + $0x7] sm:$0x1] %v451_v3  ;;  %v483_v15 = vmul.f32 %v482_v13, %v481_v0  ;;  %v513_v18 = vmul.f32 0.9801987, %v512_v6  ;;  %v1352_v19 = vmul.f32 0.99004984, %v361_v14  ;;  %s1377_s10 = scalar_lea.hbm %s1447_s6, %s776_s18 }
  0x78   : > { %v493_v16 = vstv %s489_s24  ;;  %s500_s1 = scvt.s32.f32 %s1329_s25  ;;  %v442_v20 = vadd.f32 %v440_v59, %v431_v10  ;;  %463 = vst [vmem:[%s1250_s19 + $0x8] sm:$0x1] %v462_v11  ;;  %v473_v21 = vadd.f32 %v472_v12, %v469_v55  ;;  %v524_v24 = vmul.f32 0.9801987, %v523_v9  ;;  %v534_v28 = vld [vmem:[%s1250_s19 + $0xf] sm:$0x1] }
  0x79   : > { %v494_v22 = vmul.f32 %v493_v16, %v492_v1  ;;  %s511_s28 = scvt.s32.f32 %s1333_s14  ;;  %v484_v25 = vadd.f32 %v483_v15, %v480_v61  ;;  %vm363_vm0 = vcmp.ge.f32.partialorder %v1352_v19, 1.0  ;;  %v536_v35 = vld [vmem:[%s1222_s23 + $0xf] sm:$0x1]  ;;  %v535_v41 = vmul.f32 0.9801987, %v534_v28  ;;  %s580_s22 = sshll.u32 %s1250_s19, 4  ;;  %s1380_s22 = int_to_ptr.vmem [resolvable:$true] %s580_s22 }
  0x7a   : > { %v504_v26 = vstv %s500_s1  ;;  %s522_s11 = scvt.s32.f32 %s1339_s9  ;;  %v453_v29 = vadd.f32 %v451_v3, %v442_v20  ;;  %474 = vst [vmem:[%s1250_s19 + $0x9] sm:$0x1] %v473_v21  ;;  %v773_v37 = vsel %vm363_vm0, 1.0, %v1048_v36  ;;  %s938_s9 = scalar_lea.vmem %s1380_s22, 256 }
  0x7b   : > { %v495_v30 = vadd.f32 %v494_v22, %v491_v5  ;;  %v505_v31 = vmul.f32 %v504_v26, %v503_v17  ;;  %v515_v32 = vstv %s511_s28  ;;  %485 = vst [vmem:[%s1250_s19 + $0xa] sm:$0x1] %v484_v25  ;;  %545 = vst [vmem:[%s343_s15] sm:$0x1] %v773_v37  ;;  %s562_s15 = scalar_lea.sflag [#allocation7], %s1218_s30  ;;  %p939_p4 = scmp.ne.s32.totalorder %s1380_s22, %s938_s9 }
  0x7c   : > { %v516_v33 = vmul.f32 %v515_v32, %v514_v23  ;;  %v526_v34 = vstv %s522_s11  ;;  %s533_s21 = scvt.s32.f32 %s1347_s27  ;;  %v464_v38 = vadd.f32 %v462_v11, %v453_v29  ;;  %s1049_s17 = smov [#allocation10]  }
  0x7d   : > { %496 = vst [vmem:[%s1250_s19 + $0xb] sm:$0x1] %v495_v30  ;;  %v506_v39 = vadd.f32 %v505_v31, %v502_v8  ;;  %v527_v40 = vmul.f32 %v526_v34, %v525_v27  ;;  %p940_p7 = pnand %p939_p4, %p1154_p1  ;;  %s942_s20 = sshll.u32 %s1049_s17, 4  ;;  %s943_s20 = int_to_ptr.vmem [resolvable:$false] %s942_s20 }
  0x7e   : > { %v517_v42 = vadd.f32 %v516_v33, %v513_v18  ;;  %v537_v43 = vstv %s533_s21  ;;  %v475_v44 = vadd.f32 %v473_v21, %v464_v38  ;;  %s944_s24 = scalar_lea.vmem %s943_s20, 512  ;;  %p945_p10 = scmp.lt.s32.totalorder %s1380_s22, %s943_s20 }
  0x7f   : > { %507 = vst [vmem:[%s1250_s19 + $0xc] sm:$0x1] %v506_v39  ;;  %v528_v45 = vadd.f32 %v527_v40, %v524_v24  ;;  %v538_v46 = vmul.f32 %v537_v43, %v536_v35  ;;  %p941_p9 = pneg %p940_p7  ;;  %p946_p11 = scmp.lt.s32.totalorder %s944_s24, %s938_s9 }
  0x80   : > { %518 = vst [vmem:[%s1250_s19 + $0xd] sm:$0x1] %v517_v42  ;;  %v486_v47 = vadd.f32 %v484_v25, %v475_v44 }
  0x81   : > { %529 = vst [vmem:[%s1250_s19 + $0xe] sm:$0x1] %v528_v45  ;;  %v539_v48 = vadd.f32 %v538_v46, %v535_v41  ;;  %p947_p8 = por %p946_p11, %p945_p10 }
  0x82   : > { %v497_v49 = vadd.f32 %v495_v30, %v486_v47 }
  0x83   : > { %540 = vst [vmem:[%s1250_s19 + $0xf] sm:$0x1] %v539_v48  ;;  %p948_p12 = pnand %p947_p8, %p941_p9 }
  0x85   : > { %951 = shalt.err (!%p948_p12)
}
  0x86   : > { %s952_s19 = scalar_lea.hbm %s1377_s10, 256  ;;  %s956_s28 = scalar_lea.hbm %s1447_s6, 512 }
  0x87   : > { %p953_p13 = scmp.ne.s32.totalorder %s1377_s10, %s952_s19  ;;  %p957_p6 = scmp.lt.s32.totalorder %s1377_s10, %s1447_s6 }
  0x88   : > { %p958_p0 = scmp.lt.s32.totalorder %s956_s28, %s952_s19 }
  0x89   : > { %p954_p3 = pnand %p953_p13, %p1154_p1 }
  0x8a   : > { %p959_p4 = por %p958_p0, %p957_p6 }
  0x8b   : > { %p955_p5 = pneg %p954_p3 }
  0x8d   : > { %p960_p7 = pnand %p959_p4, %p955_p5 }
  0x8f   : > { %963 = shalt.err (!%p960_p7)
}
  0x90   : > { %s1050_s18 = smov 128   ;;  %s1051_s25 = smov 256   ;;  %v508_v50 = vadd.f32 %v506_v39, %v497_v49 }
  0x91   : > { %s1052_s14 = smov 8  }
  0x92   : > { %783 = dma.vmem_to_hbm [thread:$0]  (%p1154_p1), %s1380_s22, 256, %s1377_s10, %s562_s15, %s1050_s18, %s1051_s25, %s1052_s14   ;;  %v519_v51 = vadd.f32 %v517_v42, %v508_v50 }
  0x94   : > { %v530_v52 = vadd.f32 %v528_v45, %v519_v51 }
  0x96   : > { %v541_v53 = vadd.f32 %v539_v48, %v530_v52 }
  0x98   : > { %v542_v54 = vadd.f32 %v541_v53, %v1352_v19 }
  0x9a   : > { %v543_v55 = vsub.f32 %v542_v54, %v773_v37 }
  0x9c   : > { %544 = vst [vmem:[#allocation2] sm:$0x1] %v543_v55  ;;  %546 = vst [vmem:[%s350_s13] sm:$0x1] %v543_v55 }
  0x9d PF: > { %p797_p9 = scmp.ge.s32.totalorder %s1040_s8, 2  ;;  %s615_s16 = sand.u32 1, %s1012_s0  }
  0x9e   : > { %s616_s30 = scalar_lea.sflag [#allocation7], %s615_s16 }
  0x9f   : > { %p793_p1 = pnand %p797_p9, %p1160_p2 }
  0xa1   : > { %p794_p10 = pneg %p793_p1 }
  0xa3   : > { %1007 = dma.done.wait (%p794_p10), %s616_s30, 256  }
  0xa4   : > { %1009 = vsyncadd (%p794_p10), %s616_s30, 4294967040  ;;  %s32_s8 = sadd.s32 1, %s1040_s8   ;;  %s1471_s22 = sld [smem:[#allocation15_spill]] }
  0xa5   : > { %p29_p11 = scmp.ge.s32.totalorder %s32_s8, 18   ;;  %s1472_s27 = sld [smem:[#allocation20_spill]] }
  0xa6   : > { %s1473_s28 = sld [smem:[#allocation16_spill]]  ;;  %s1476_s0 = smov %s1016_s26 }
  0xa7   : > { %s1474_s30 = sld [smem:[#allocation17_spill]]  ;;  %s1478_s29 = smov %s1036_s7 }
  0xa8   : > { %s1475_s12 = sld [smem:[#allocation18_spill]] }
  0xaa   : > { %s1477_s26 = smov %s1471_s22  ;;  %31 = sbr.rel (!%p29_p11) target bundleno = 24 (0x18), region = 121 }
  0xae   : > { %s1479_s7 = smov %s1475_s12 }
  0xaf   :  { %621 = vsyncpa [#allocation6], 1 }
  0xb0   :  { %623 = vsyncpa [#allocation6 + $0x1], 1 }
  0xb1   :  { %624 = vsyncpa [#allocation9], 1 }
  0xb2   :  { %626 = vsyncpa [#allocation9 + $0x1], 1 }
  0xb3   :  { %627 = vsyncpa [#allocation7], 1 }
  0xb4   :  { %629 = vsyncpa [#allocation7 + $0x1], 1 }

</bundles_post_ra>
